<compile_context>
chip_gen: v5e
topology: v5e:2x2
jax: 0.10.0
libtpu: 0.0.40
codegen_flags: <defaults>
</compile_context>

<pallas_src>
import functools

import jax
import jax.numpy as jnp
from jax.experimental import pallas as pl
from jax.experimental.pallas import tpu as pltpu

LANE = 128


def _round_up(x, m):
    return ((x + m - 1) // m) * m


def actor_critic_kernel(x_ref, w1_ref, b1_ref, wh_ref, bh_ref, out_ref):
    # x arrives as raw f32 straight from HBM; the bf16 cast is a cheap VPU
    # pack hidden under the tile DMAs (no wrapper-side pad/cast pass).
    x = x_ref[...].astype(jnp.bfloat16)

    # fc: Linear(input_dim, hidden) + Tanh  (bf16 MXU, f32 accumulate,
    # bias-add and tanh kept in f32 -> v5e friendly).
    h = jnp.tanh(
        jnp.dot(x, w1_ref[...], preferred_element_type=jnp.float32)
        + b1_ref[...]
    )

    # Fused actor|critic head: Linear(hidden, output_dim + 1), lane-dense.
    # NOTE: h is re-quantized to bf16 for the MXU (accuracy choice; keep the
    # LHS f32 here if exact end-to-end f32 head math is required).
    out_ref[...] = (
        jnp.dot(h.astype(wh_ref.dtype), wh_ref[...],
                preferred_element_type=jnp.float32)
        + bh_ref[...]
    ).astype(out_ref.dtype)


def pack_params(params):
    """One-time weight packing (call once, outside the per-step hot path).

    * actor and critic heads fused into one lane-dense weight [H, O+1],
    * output feature dims zero-padded to multiples of 128 lanes,
    * weights cast to bf16, biases kept f32,
    * the contraction (input) dim is left UNPADDED so x can be streamed as-is.
    """
    input_dim, hidden_dim = params["w1"].shape
    output_dim = params["wa"].shape[1]
    Hp = _round_up(hidden_dim, LANE)
    Np = _round_up(output_dim + 1, LANE)   # fused head width (logits | value)

    w1p = jnp.zeros((input_dim, Hp), jnp.bfloat16)
    w1p = w1p.at[:, :hidden_dim].set(params["w1"].astype(jnp.bfloat16))
    b1p = jnp.zeros((1, Hp), jnp.float32)
    b1p = b1p.at[:, :hidden_dim].set(params["b1"])

    whp = jnp.zeros((Hp, Np), jnp.bfloat16)
    whp = whp.at[:hidden_dim, :output_dim].set(params["wa"].astype(jnp.bfloat16))
    whp = whp.at[:hidden_dim, output_dim:output_dim + 1].set(
        params["wc"].astype(jnp.bfloat16))
    bhp = jnp.zeros((1, Np), jnp.float32)
    bhp = bhp.at[:, :output_dim].set(params["ba"])
    bhp = bhp.at[:, output_dim:output_dim + 1].set(params["bc"])

    return {
        "w1p": w1p, "b1p": b1p, "whp": whp, "bhp": bhp,
        "input_dim": int(input_dim),
        "hidden_dim": int(hidden_dim),
        "output_dim": int(output_dim),
    }


def _choose_batch_tile(B, tile_b):
    # Small batch: one block covering the whole batch (a full-dim block is
    # always a legal BlockSpec, no padding needed).
    if B <= 256:
        return B
    # Large batch: big tiles (amortize ~0.35 us/grid-step), multiple of 256
    # for MXU M, and at least 2 grid steps so v7x's two TensorCores can both
    # work on the "parallel" batch axis.
    tb = min(max(256, _round_up(tile_b, 256)), 2048)
    return min(tb, _round_up(pl.cdiv(B, 2), 16))


def _resident_spec(shape):
    # Constant index_map + single buffer: loaded once, stays VMEM-resident.
    return pl.BlockSpec(shape, lambda i: (0, 0), pipeline_mode=pl.Buffered(1))


def actor_critic_forward(x, packed, *, tile_b=1024, out_dtype=jnp.bfloat16):
    """x: [B, input_dim] f32. packed: dict from pack_params.

    Returns (logits [B, output_dim] f32, value [B, 1] f32), matching the
    PyTorch ActorCritic.forward semantics (up to bf16 input/weight/output
    rounding applied for TPU throughput).
    """
    B, input_dim = x.shape
    assert input_dim == packed["input_dim"]
    output_dim = packed["output_dim"]
    w1p, b1p, whp, bhp = (packed["w1p"], packed["b1p"],
                          packed["whp"], packed["bhp"])
    Hp = w1p.shape[1]
    Np = whp.shape[1]

    TB = _choose_batch_tile(B, tile_b)
    grid_b = pl.cdiv(B, TB)
    Bp = grid_b * TB
    if Bp != B:
        # Only when B is not a multiple of the tile; padded rows are inert
        # (sliced away below).
        x = jnp.pad(x, ((0, Bp - B), (0, 0)))

    out_itemsize = jnp.dtype(out_dtype).itemsize

    # VMEM budget: single-buffered resident weights, double-buffered x / out
    # streams, f32 hidden intermediate + its bf16 copy, plus headroom.
    needed = (w1p.size * 2 + whp.size * 2 + b1p.size * 4 + bhp.size * 4
              + 2 * TB * input_dim * 4
              + 2 * TB * Np * out_itemsize
              + TB * Hp * 6)
    # Cap at 48 MiB so the setting is also safe on v7x (64 MiB physical);
    # v5e / v6e could go up to ~100 MiB if ever needed.
    vmem_limit = int(min(max(needed + (8 << 20), 32 << 20), 48 << 20))

    # TODO(synk): if resident bf16 weights ever approach ~40 MiB (very large
    # hidden/input dims), add a K/H reduction grid axis ("arbitrary") with a
    # VMEM f32 accumulator instead of holding the full weights resident.

    flops = 2 * Bp * (input_dim * Hp + Hp * Np)
    transcendentals = Bp * Hp
    bytes_accessed = (Bp * input_dim * 4
                      + w1p.size * 2 + whp.size * 2
                      + b1p.size * 4 + bhp.size * 4
                      + Bp * Np * out_itemsize)

    out = pl.pallas_call(
        actor_critic_kernel,
        out_shape=jax.ShapeDtypeStruct((Bp, Np), out_dtype),
        grid_spec=pltpu.PrefetchScalarGridSpec(
            num_scalar_prefetch=0,
            grid=(grid_b,),
            in_specs=[
                pl.BlockSpec((TB, input_dim), lambda i: (i, 0)),  # x: streamed
                _resident_spec((input_dim, Hp)),                  # w1
                _resident_spec((1, Hp)),                          # b1
                _resident_spec((Hp, Np)),                         # fused head W
                _resident_spec((1, Np)),                          # fused head b
            ],
            out_specs=pl.BlockSpec((TB, Np), lambda i: (i, 0)),
        ),
        compiler_params=pltpu.CompilerParams(
            dimension_semantics=("parallel",),
            vmem_limit_bytes=vmem_limit,
        ),
        cost_estimate=pl.CostEstimate(
            flops=flops,
            transcendentals=transcendentals,
            bytes_accessed=bytes_accessed,
        ),
    )(x, w1p, b1p, whp, bhp)

    logits = out[:B, :output_dim].astype(jnp.float32)
    value = out[:B, output_dim:output_dim + 1].astype(jnp.float32)
    return logits, value


def init_params(key, input_dim, hidden_dim, output_dim):
    """Deterministic synthetic init (PyTorch-Linear-like uniform bounds).

    Weights are stored as [in_features, out_features] (PyTorch W.T) so the
    kernel computes y = x @ W + b directly.
    """
    k1, k2, k3, k4, k5, k6 = jax.random.split(key, 6)

    def lin_init(kw, kb, fan_in, fan_out):
        bound = 1.0 / jnp.sqrt(fan_in)
        w = jax.random.uniform(kw, (fan_in, fan_out), jnp.float32, -bound, bound)
        b = jax.random.uniform(kb, (1, fan_out), jnp.float32, -bound, bound)
        return w, b

    w1, b1 = lin_init(k1, k2, input_dim, hidden_dim)
    wa, ba = lin_init(k3, k4, hidden_dim, output_dim)
    wc, bc = lin_init(k5, k6, hidden_dim, 1)
    return {"w1": w1, "b1": b1, "wa": wa, "ba": ba, "wc": wc, "bc": bc}


if __name__ == "__main__":
    B, input_dim, hidden_dim, output_dim = 8, 16, 32, 4

    key = jax.random.PRNGKey(0)
    kx, kp = jax.random.split(key)
    x = jax.random.normal(kx, (B, input_dim), jnp.float32)
    params = init_params(kp, input_dim, hidden_dim, output_dim)

    packed = pack_params(params)          # one-time pack, outside the hot path

    logits, value = actor_critic_forward(x, packed)
    jax.block_until_ready((logits, value))

    # Reference mirroring the kernel's rounding choices: bf16 inputs/weights,
    # f32 MXU accumulation + f32 bias/tanh, bf16 output store.
    def bf(a):
        return a.astype(jnp.bfloat16).astype(jnp.float32)

    h_ref = jnp.tanh(bf(x) @ bf(params["w1"]) + params["b1"])
    logits_ref = bf(bf(h_ref) @ bf(params["wa"]) + params["ba"])
    value_ref = bf(bf(h_ref) @ bf(params["wc"]) + params["bc"])

    assert logits.shape == (B, output_dim) and value.shape == (B, 1)
    assert jnp.allclose(logits, logits_ref, atol=1e-2, rtol=1e-2)
    assert jnp.allclose(value, value_ref, atol=1e-2, rtol=1e-2)

    print("KERNEL_OK")
</pallas_src>

<mosaic_0001>
module attributes {stable_mosaic.version = 11 : i64} {
  func.func @actor_critic_kernel(%arg0: i32, %arg1: memref<8x16xf32, #tpu.memory_space<vmem>>, %arg2: memref<16x128xbf16, #tpu.memory_space<vmem>>, %arg3: memref<1x128xf32, #tpu.memory_space<vmem>>, %arg4: memref<128x128xbf16, #tpu.memory_space<vmem>>, %arg5: memref<1x128xf32, #tpu.memory_space<vmem>>, %arg6: memref<8x128xbf16, #tpu.memory_space<vmem>>) attributes {dimension_semantics = [#tpu.dimension_semantics<parallel>], iteration_bounds = array<i64: 1>, scalar_prefetch = 0 : i64, scratch_operands = 0 : i64, tpu.core_type = #tpu.core_type<tc>, window_params = [{transform_indices = @transform_0, window_bounds = array<i64: 8, 16>}, {pipeline_mode = #tpu.pipeline_mode<synchronous>, transform_indices = @transform_1, window_bounds = array<i64: 16, 128>}, {pipeline_mode = #tpu.pipeline_mode<synchronous>, transform_indices = @transform_2, window_bounds = array<i64: 1, 128>}, {pipeline_mode = #tpu.pipeline_mode<synchronous>, transform_indices = @transform_3, window_bounds = array<i64: 128, 128>}, {pipeline_mode = #tpu.pipeline_mode<synchronous>, transform_indices = @transform_4, window_bounds = array<i64: 1, 128>}, {transform_indices = @transform_5, window_bounds = array<i64: 8, 128>}]} {
    %c0 = arith.constant 0 : index
    %c0_0 = arith.constant 0 : index
    %0 = vector.load %arg1[%c0, %c0_0] : memref<8x16xf32, #tpu.memory_space<vmem>>, vector<8x16xf32>
    %1 = arith.truncf %0 : vector<8x16xf32> to vector<8x16xbf16>
    %c0_1 = arith.constant 0 : index
    %c0_2 = arith.constant 0 : index
    %2 = vector.load %arg2[%c0_1, %c0_2] : memref<16x128xbf16, #tpu.memory_space<vmem>>, vector<16x128xbf16>
    %cst = arith.constant dense<0.000000e+00> : vector<8x128xf32>
    %3 = tpu.matmul %1, %2, %cst {dimension_numbers = #tpu.dot_dimension_numbers<[1], [0], [0], [1], [0, 0, 1, 1], [], []>} : vector<8x16xbf16>, vector<16x128xbf16>, vector<8x128xf32> -> vector<8x128xf32>
    %c0_3 = arith.constant 0 : index
    %c0_4 = arith.constant 0 : index
    %4 = vector.load %arg3[%c0_3, %c0_4] : memref<1x128xf32, #tpu.memory_space<vmem>>, vector<1x128xf32>
    %5 = vector.broadcast %4 : vector<1x128xf32> to vector<8x128xf32>
    %6 = arith.addf %3, %5 : vector<8x128xf32>
    %7 = math.tanh %6 : vector<8x128xf32>
    %8 = arith.truncf %7 : vector<8x128xf32> to vector<8x128xbf16>
    %c0_5 = arith.constant 0 : index
    %c0_6 = arith.constant 0 : index
    %9 = vector.load %arg4[%c0_5, %c0_6] : memref<128x128xbf16, #tpu.memory_space<vmem>>, vector<128x128xbf16>
    %cst_7 = arith.constant dense<0.000000e+00> : vector<8x128xf32>
    %10 = tpu.matmul %8, %9, %cst_7 {dimension_numbers = #tpu.dot_dimension_numbers<[1], [0], [0], [1], [0, 0, 1, 1], [], []>} : vector<8x128xbf16>, vector<128x128xbf16>, vector<8x128xf32> -> vector<8x128xf32>
    %c0_8 = arith.constant 0 : index
    %c0_9 = arith.constant 0 : index
    %11 = vector.load %arg5[%c0_8, %c0_9] : memref<1x128xf32, #tpu.memory_space<vmem>>, vector<1x128xf32>
    %12 = vector.broadcast %11 : vector<1x128xf32> to vector<8x128xf32>
    %13 = arith.addf %10, %12 : vector<8x128xf32>
    %14 = arith.truncf %13 : vector<8x128xf32> to vector<8x128xbf16>
    %c0_10 = arith.constant 0 : index
    %c0_11 = arith.constant 0 : index
    %15 = vector.load %arg6[%c0_10, %c0_11] : memref<8x128xbf16, #tpu.memory_space<vmem>>, vector<8x128xbf16>
    tpu.vector_store %arg6[%c0_10, %c0_11], %14 {strides = array<i32>} : memref<8x128xbf16, #tpu.memory_space<vmem>>, vector<8x128xbf16>,
    return
  }
  func.func @transform_0(%arg0: i32) -> (i32, i32) {
    %c0_i32 = arith.constant 0 : i32
    %c0_i32_0 = arith.constant 0 : i32
    return %arg0, %c0_i32 : i32, i32
  }
  func.func @transform_1(%arg0: i32) -> (i32, i32) {
    %c0_i32 = arith.constant 0 : i32
    %c0_i32_0 = arith.constant 0 : i32
    %c0_i32_1 = arith.constant 0 : i32
    return %c0_i32, %c0_i32_0 : i32, i32
  }
  func.func @transform_2(%arg0: i32) -> (i32, i32) {
    %c0_i32 = arith.constant 0 : i32
    %c0_i32_0 = arith.constant 0 : i32
    %c0_i32_1 = arith.constant 0 : i32
    return %c0_i32, %c0_i32_0 : i32, i32
  }
  func.func @transform_3(%arg0: i32) -> (i32, i32) {
    %c0_i32 = arith.constant 0 : i32
    %c0_i32_0 = arith.constant 0 : i32
    %c0_i32_1 = arith.constant 0 : i32
    return %c0_i32, %c0_i32_0 : i32, i32
  }
  func.func @transform_4(%arg0: i32) -> (i32, i32) {
    %c0_i32 = arith.constant 0 : i32
    %c0_i32_0 = arith.constant 0 : i32
    %c0_i32_1 = arith.constant 0 : i32
    return %c0_i32, %c0_i32_0 : i32, i32
  }
  func.func @transform_5(%arg0: i32) -> (i32, i32) {
    %c0_i32 = arith.constant 0 : i32
    %c0_i32_0 = arith.constant 0 : i32
    return %arg0, %c0_i32 : i32, i32
  }
}

</mosaic_0001>

<bundles_post_ra>
// kernel: tpu_custom_call.1
= control target key start
LH: loop header
LB: loop body
LE: loop exit
PB: predicated region body
PF: predicated region fallthrough
CT: control target
= control target key end

     0   :  { %10 = vsyncpa [#allocation3], 0  ;;  %s413_s0 = inlined_call_operand.hbm [shape: f32[8,16], index: 0, kind: input, shape index: {}]   ;;  %s414_s1 = inlined_call_operand.hbm [shape: bf16[16,128], index: 1, kind: input, shape index: {}]   ;;  %s415_s2 = inlined_call_operand.vmem [shape: f32[1,128], index: 2, kind: input, shape index: {}]   ;;  %s416_s3 = inlined_call_operand.hbm [shape: bf16[128,128], index: 3, kind: input, shape index: {}]   ;;  %s417_s4 = inlined_call_operand.vmem [shape: f32[1,128], index: 4, kind: input, shape index: {}]   ;;  %s418_s5 = inlined_call_operand.hbm [shape: bf16[8,128], index: 5, kind: output, shape index: {}]  }
   0x1   :  { %11 = vsyncpa [#allocation6], 0  ;;  %s28_s20 = sshll.u32 %s414_s1, 4  ;;  %s29_s20 = int_to_ptr.hbm [resolvable:$true] %s28_s20 }
   0x2   :  { %12 = vsyncpa [#allocation4], 0  ;;  %s359_s21 = smov [#allocation5]   ;;  %s18_s25 = sshll.u32 %s413_s0, 4  ;;  %s19_s25 = int_to_ptr.hbm [resolvable:$true] %s18_s25 }
   0x3   :  { %s30_s22 = sshll.u32 %s359_s21, 4  ;;  %s360_s26 = smov 64   ;;  %s31_s22 = int_to_ptr.vmem [resolvable:$true] %s30_s22 }
   0x4   :  { %s361_s27 = smov 4   ;;  %s362_s28 = smov [#allocation2]  }
   0x5   :  { %36 = dma.hbm_to_vmem [thread:$0]  %s29_s20, 128, %s31_s22, [#allocation6], %s360_s26, %s360_s26, %s361_s27  }
   0x6   :  { %s20_s29 = sshll.u32 %s362_s28, 4  ;;  %s43_s7 = sshll.u32 %s416_s3, 4  ;;  %s21_s29 = int_to_ptr.vmem [resolvable:$true] %s20_s29  ;;  %s44_s7 = int_to_ptr.hbm [resolvable:$true] %s43_s7 }
   0x7   :  { %23 = dma.hbm_to_vmem [thread:$0]  %s19_s25, 128, %s21_s29, [#allocation3]  }
   0x8   :  { %s363_s1 = smov [#allocation7]  }
   0x9   :  { %s45_s8 = sshll.u32 %s363_s1, 4  ;;  %s46_s8 = int_to_ptr.vmem [resolvable:$true] %s45_s8 }
   0xa   :  { %51 = dma.hbm_to_vmem [thread:$0]  %s44_s7, 1024, %s46_s8, [#allocation6], %s360_s26, %s360_s26, %s361_s27  }
   0xb   :  { %353 = dma.done.wait [#allocation3], 128  }
   0xc   :  { %354 = vsyncadd [#allocation3], 4294967168 }
   0xd   :  { %355 = dma.done.wait [#allocation6], 1152  }
   0xe   :  { %356 = vsyncadd [#allocation6], 4294966144  ;;  %v238_v0 = vld [vmem:[#allocation5] sm:$0xff]  ;;  %v67_v1 = vld [vmem:[#allocation2] sm:$0xff]  ;;  %vm81_vm0 = vcmask 130048   ;;  %s364_s11 = smov [#allocation8]  }
   0xf   :  { %v246_v2 = vld [vmem:[#allocation7 + $0x38] sm:$0xff]  ;;  %v68_v3 = vpack.c.bf16 %v67_v1, %v67_v1  ;;  %92 = vmatpush.bf16.msra.mxu0 %v238_v0  ;;  %v245_v4 = vld [vmem:[#allocation7 + $0x30] sm:$0xff]  ;;  %v244_v5 = vld [vmem:[#allocation7 + $0x28] sm:$0xff]  ;;  %s188_s12 = sshll.u32 %s364_s11, 4  ;;  %s190_s15 = sshll.u32 %s418_s5, 4  ;;  %s189_s12 = int_to_ptr.vmem [resolvable:$true] %s188_s12  ;;  %s191_s15 = int_to_ptr.hbm [resolvable:$true] %s190_s15 }
  0x10   :  { %168 = vmatpush.bf16.msra.mxu1 %v246_v2  ;;  %v243_v6 = vld [vmem:[#allocation7 + $0x20] sm:$0xff]  ;;  %v242_v7 = vld [vmem:[#allocation7 + $0x18] sm:$0xff]  ;;  %v241_v8 = vld [vmem:[#allocation7 + $0x10] sm:$0xff] }
  0x11   :  { %v240_v9 = vld [vmem:[#allocation7 + $0x8] sm:$0xff]  ;;  %v239_v10 = vld [vmem:[#allocation7] sm:$0xff]  ;;  %v253_v11 = vld [vmem:[%s415_s2] ss:$0 sm:$0xff] }
  0x12   :  { %205 = vmatmul.msk.bf16.vlgmr.msra.gmra.mxu0 %vm81_vm0, %v68_v3  ;;  %v254_v17 = vld [vmem:[%s417_s4] ss:$0 sm:$0xff] }
  0x14   :  { %169 = vmatpush.bf16.msra.mxu1 %v245_v4 }
  0x18   :  { %170 = vmatpush.bf16.msra.mxu1 %v244_v5 }
  0x1c   :  { %171 = vmatpush.bf16.msra.mxu1 %v243_v6 }
  0x20   :  { %172 = vmatpush.bf16.msra.mxu1 %v242_v7 }
  0x24   :  { %173 = vmatpush.bf16.msra.mxu1 %v241_v8 }
  0x28   :  { %174 = vmatpush.bf16.msra.mxu1 %v240_v9 }
  0x2c   :  { %175 = vmatpush.bf16.msra.mxu1 %v239_v10 }
  0x8f   :  { %v94_v12 = vpop.f32.mrf.mxu0 }
  0x90   :  { %v95_v13 = vadd.f32 %v253_v11, %v94_v12 }
  0x92   :  { %255 = vtanh.f32 %v95_v13 }
  0x97   :  { %v96_v14 = vpop.f32.mrf.mxu0 }
  0x98   :  { %v256_v15 = vpop.eup %255 }
  0x99   :  { %v99_v16 = vpack.c.bf16 %v256_v15, %v256_v15 }
  0x9b   :  { %176 = vmatmul.bf16.vlgmr.msra.gmra.mxu1 %v99_v16 }
 0x118   :  { %v177_v18 = vpop.f32.mrf.mxu1 }
 0x119   :  { %v178_v19 = vadd.f32 %v254_v17, %v177_v18 }
 0x11b   :  { %v181_v20 = vpack.c.bf16 %v178_v19, %v178_v19 }
 0x11d   :  { %182 = vst [vmem:[#allocation8] sm:$0xf] %v181_v20 }
 0x11e   :  { %193 = dma.vmem_to_hbm [thread:$0]  %s189_s12, 64, %s191_s15, [#allocation4]  }
 0x120   :  { %v179_v21 = vpop.f32.mrf.mxu1 }
 0x121   :  { %357 = dma.done.wait [#allocation4], 64  }
 0x122   :  { %358 = vsyncadd [#allocation4], 4294967232 }
 0x123   :  { %198 = vsyncpa [#allocation3], 1 }
 0x124   :  { %199 = vsyncpa [#allocation6], 1 }
 0x125   :  { %200 = vsyncpa [#allocation4], 1 }

</bundles_post_ra>
